<compile_context>
chip_gen: v5e
topology: v5e:2x2
jax: 0.10.0
libtpu: 0.0.40
codegen_flags: <defaults>
</compile_context>

<pallas_src>
import functools

import jax
import jax.numpy as jnp
from jax import lax
from jax.experimental import pallas as pl
from jax.experimental.pallas import tpu as pltpu

_NEG_LARGE = -1e30  # used instead of -inf so no inf-inf / 0*inf paths appear


# ---------------------------------------------------------------------------
# Path A (default): single pass, one (bt, C, HW) tile per grid step.
# ---------------------------------------------------------------------------
def _se_fused_kernel(wm_ref, bm_ref, w1_ref, w2_ref, x_ref, o_ref):
    x = x_ref[...]                                        # (bt, C, HW), input dtype
    bt, c, _ = x.shape

    wm = wm_ref[...].astype(x.dtype)                      # (1, C)  conv_mask weight
    bm = bm_ref[0]                                        # f32 scalar (SMEM)

    # conv_mask 1x1 conv C->1 over spatial == per-batch (1,C)x(C,HW) matmul.
    # TODO(synk): verify with pl.lower_as_mlir that Mosaic does not serialize
    # these M=1 / N=1 per-batch matmuls pathologically; if it does, move the
    # reductions onto VPU multiplies + sublane/lane sums (XLU) instead.
    wm_b = jnp.broadcast_to(wm[None], (bt, 1, c))
    logits = jnp.einsum('boc,bcs->bos', wm_b, x,
                        preferred_element_type=jnp.float32) + bm      # (bt,1,HW)

    # softmax over HW with the normalization folded into the context
    m = jnp.max(logits, axis=-1, keepdims=True)           # (bt,1,1)
    e = jnp.exp(logits - m)                               # (bt,1,HW) f32
    denom = jnp.sum(e, axis=-1, keepdims=True)            # (bt,1,1)

    # context[b,c] = (sum_s x[b,c,s] * e[b,s]) / denom[b]: the HW-long
    # reduction runs on the MXU; no (C,HW) temporary, no full-tile f32 upcast.
    ctx = jnp.einsum('bcs,bos->bco', x, e.astype(x.dtype),
                     preferred_element_type=jnp.float32)              # (bt,C,1)
    context = ctx[..., 0] / denom[..., 0]                 # (bt, C) f32

    # SE bottleneck C -> C/r -> C: tiny, keep it in f32 on the VPU.
    w1 = w1_ref[...].astype(jnp.float32)                  # (Cr, C)
    w2 = w2_ref[...].astype(jnp.float32)                  # (C, Cr)
    hidden = jnp.maximum(
        jnp.sum(w1[None] * context[:, None, :], axis=-1), 0.0)        # (bt, Cr)
    scale = jax.nn.sigmoid(
        jnp.sum(w2[None] * hidden[:, None, :], axis=-1))              # (bt, C)

    # Broadcast-multiply in the input dtype: avoids a full-tile f32 upcast;
    # rounding `scale` once to bf16 is far below output precision.
    o_ref[...] = (x * scale.astype(x.dtype)[:, :, None]).astype(o_ref.dtype)


# ---------------------------------------------------------------------------
# Path B (large C*HW): two passes over spatial tiles.
#   pass 1: per-batch channel scale via online softmax over HW tiles
#   pass 2: apply the scale over HW tiles
# ---------------------------------------------------------------------------
def _se_scale_kernel(wm_ref, bm_ref, w1_ref, w2_ref, x_ref, scale_ref,
                     m_sc, l_sc, ctx_sc, *, hw_total, hw_tile):
    k = pl.program_id(1)

    @pl.when(k == 0)
    def _():
        m_sc[...] = jnp.full_like(m_sc, _NEG_LARGE)
        l_sc[...] = jnp.zeros_like(l_sc)
        ctx_sc[...] = jnp.zeros_like(ctx_sc)

    x = x_ref[0]                                          # (C, thw), input dtype
    # Zero spatial positions past HW so the MXU contraction never touches
    # stale VMEM on a partial last tile (0 * garbage would otherwise risk NaN).
    lane = lax.broadcasted_iota(jnp.int32, (1, x.shape[-1]), 1) + k * hw_tile
    valid = lane < hw_total                               # (1, thw)
    x = jnp.where(valid, x, jnp.zeros_like(x))

    wm = wm_ref[...].astype(x.dtype)                      # (1, C)
    bm = bm_ref[0]                                        # f32 scalar (SMEM)
    logits = jnp.dot(wm, x, preferred_element_type=jnp.float32) + bm  # (1, thw)
    logits = jnp.where(valid, logits, _NEG_LARGE)

    # online softmax across HW tiles, normalization folded into the context
    m_prev = m_sc[...]                                    # (1, 1)
    m_new = jnp.maximum(m_prev, jnp.max(logits, axis=-1, keepdims=True))
    alpha = jnp.exp(m_prev - m_new)                       # (1, 1)
    e = jnp.exp(logits - m_new)                           # (1, thw) f32
    l_sc[...] = alpha * l_sc[...] + jnp.sum(e, axis=-1, keepdims=True)
    ctx_sc[...] = alpha * ctx_sc[...] + jnp.einsum(
        'os,cs->oc', e.astype(x.dtype), x, preferred_element_type=jnp.float32)
    m_sc[...] = m_new

    @pl.when(k == pl.num_programs(1) - 1)
    def _():
        context = ctx_sc[...] / l_sc[...]                 # (1, C)
        w1 = w1_ref[...].astype(jnp.float32)              # (Cr, C)
        w2 = w2_ref[...].astype(jnp.float32)              # (C, Cr)
        hidden = jnp.maximum(
            jnp.sum(w1[None] * context[:, None, :], axis=-1), 0.0)    # (1, Cr)
        scale = jax.nn.sigmoid(
            jnp.sum(w2[None] * hidden[:, None, :], axis=-1))          # (1, C)
        scale_ref[...] = scale[:, None, :]                # (1, 1, C)


def _se_apply_kernel(scale_ref, x_ref, o_ref):
    x = x_ref[...]                                        # (1, C, thw)
    s = scale_ref[...][:, 0, :]                           # (1, C) f32
    o_ref[...] = (x * s.astype(x.dtype)[:, :, None]).astype(o_ref.dtype)


# ---------------------------------------------------------------------------
# Wrapper
# ---------------------------------------------------------------------------
def _vmem_budget(max_block_bytes):
    """Generation-aware VMEM limit and per-step block budget."""
    try:
        vmem_cap = int(pltpu.get_tpu_info().vmem_capacity_bytes)
    except Exception:
        vmem_cap = 64 * 1024 * 1024                       # conservative (v7x per-TC)
    vmem_limit = (vmem_cap * 3) // 4                      # headroom for Mosaic scratch
    # in & out blocks are each double-buffered (~4x a block) + f32 temporaries
    block_budget = vmem_limit // 5
    if max_block_bytes is not None:
        block_budget = min(block_budget, int(max_block_bytes))
    return vmem_limit, block_budget


def _se_single_pass(x_flat, wm2, bm1, w1_2, w2_2, *, block_budget, vmem_limit,
                    donate_x):
    B, C, HW = x_flat.shape
    Cr = w1_2.shape[0]
    elem = x_flat.dtype.itemsize
    per_batch_bytes = C * HW * elem

    # Enough grid steps to fill the pipeline and feed both v7x TensorCores,
    # as many batch elements per step as the VMEM block budget allows.
    target_steps = min(B, 4)
    bt = max(1, min(block_budget // per_batch_bytes, pl.cdiv(B, target_steps)))
    grid_b = pl.cdiv(B, bt)
    # TODO(synk): for B == 1 on v7x (2 TCs) grid_b == 1 leaves one core idle; a
    # spatially split apply (as in the two-pass path) would balance that case.

    cost = pl.CostEstimate(
        flops=int(5 * B * C * HW),
        transcendentals=int(B * HW + B * C),
        bytes_accessed=int(2 * B * C * HW * elem + 4 * (C + 2 * C * Cr + 1)))

    return pl.pallas_call(
        _se_fused_kernel,
        out_shape=jax.ShapeDtypeStruct((B, C, HW), x_flat.dtype),
        grid_spec=pltpu.PrefetchScalarGridSpec(
            num_scalar_prefetch=0,
            grid=(grid_b,),
            in_specs=[
                pl.BlockSpec((1, C), lambda i: (0, 0)),               # conv_mask w
                pl.BlockSpec(memory_space=pltpu.MemorySpace.SMEM),    # conv_mask b
                pl.BlockSpec((Cr, C), lambda i: (0, 0)),              # se W1
                pl.BlockSpec((C, Cr), lambda i: (0, 0)),              # se W2
                pl.BlockSpec((bt, C, HW), lambda i: (i, 0, 0)),       # x
            ],
            out_specs=pl.BlockSpec((bt, C, HW), lambda i: (i, 0, 0)),
        ),
        compiler_params=pltpu.CompilerParams(
            dimension_semantics=("parallel",),
            vmem_limit_bytes=int(vmem_limit)),
        cost_estimate=cost,
        input_output_aliases={4: 0} if donate_x else {},
    )(wm2, bm1, w1_2, w2_2, x_flat)


def _se_two_pass(x_flat, wm2, bm1, w1_2, w2_2, *, block_budget, vmem_limit,
                 donate_x):
    B, C, HW = x_flat.shape
    Cr = w1_2.shape[0]
    elem = x_flat.dtype.itemsize

    # spatial tile: largest lane-aligned chunk that fits the block budget
    thw = max(128, (block_budget // (C * elem)) // 128 * 128)
    thw = min(thw, pl.cdiv(HW, 128) * 128)
    grid_hw = pl.cdiv(HW, thw)

    # ---- pass 1: per-batch channel scale (online softmax over HW tiles) ----
    scale_cost = pl.CostEstimate(
        flops=int(4 * B * C * HW),
        transcendentals=int(B * HW + B * C),
        bytes_accessed=int(B * C * HW * elem + 4 * (B * C + C + 2 * C * Cr + 1)))

    scale = pl.pallas_call(
        functools.partial(_se_scale_kernel, hw_total=HW, hw_tile=thw),
        out_shape=jax.ShapeDtypeStruct((B, 1, C), jnp.float32),
        grid_spec=pltpu.PrefetchScalarGridSpec(
            num_scalar_prefetch=0,
            grid=(B, grid_hw),
            in_specs=[
                pl.BlockSpec((1, C), lambda b, k: (0, 0)),            # conv_mask w
                pl.BlockSpec(memory_space=pltpu.MemorySpace.SMEM),    # conv_mask b
                pl.BlockSpec((Cr, C), lambda b, k: (0, 0)),           # se W1
                pl.BlockSpec((C, Cr), lambda b, k: (0, 0)),           # se W2
                pl.BlockSpec((1, C, thw), lambda b, k: (b, 0, k)),    # x spatial tile
            ],
            out_specs=pl.BlockSpec((1, 1, C), lambda b, k: (b, 0, 0)),
            scratch_shapes=[pltpu.VMEM((1, 1), jnp.float32),   # running max
                            pltpu.VMEM((1, 1), jnp.float32),   # running denom
                            pltpu.VMEM((1, C), jnp.float32)],  # running context
        ),
        compiler_params=pltpu.CompilerParams(
            dimension_semantics=("parallel", "arbitrary"),
            vmem_limit_bytes=int(vmem_limit)),
        cost_estimate=scale_cost,
    )(wm2, bm1, w1_2, w2_2, x_flat)

    # ---- pass 2: apply the per-channel scale over spatial tiles -------------
    apply_cost = pl.CostEstimate(
        flops=int(B * C * HW),
        transcendentals=0,
        bytes_accessed=int(2 * B * C * HW * elem + 4 * B * C))

    return pl.pallas_call(
        _se_apply_kernel,
        out_shape=jax.ShapeDtypeStruct((B, C, HW), x_flat.dtype),
        grid_spec=pltpu.PrefetchScalarGridSpec(
            num_scalar_prefetch=0,
            grid=(B, grid_hw),
            in_specs=[
                pl.BlockSpec((1, 1, C), lambda b, k: (b, 0, 0)),      # scale
                pl.BlockSpec((1, C, thw), lambda b, k: (b, 0, k)),    # x
            ],
            out_specs=pl.BlockSpec((1, C, thw), lambda b, k: (b, 0, k)),
        ),
        compiler_params=pltpu.CompilerParams(
            dimension_semantics=("parallel", "parallel"),
            vmem_limit_bytes=int(vmem_limit)),
        cost_estimate=apply_cost,
        input_output_aliases={1: 0} if donate_x else {},
    )(scale, x_flat)


def squeeze_and_excitation(x, wm, bm, w1, w2, *, donate_x=False,
                           max_block_bytes=None):
    """SE forward. x:(B,C,H,W), wm:(1,C,1,1), bm:(1,), w1:(Cr,C,1,1), w2:(C,Cr,1,1).

    donate_x=True enables input_output_aliases (in-place output) — only set it
    when the caller actually donates x's buffer.  max_block_bytes is a testing
    knob that caps the per-step VMEM block budget.
    """
    B, C, H, W = x.shape
    HW = H * W
    Cr = w1.shape[0]

    x_flat = x.reshape(B, C, HW)                 # view-level reshape, no HBM pass
    wm2 = wm.reshape(1, C)                       # conv_mask weight
    bm1 = bm.reshape(1).astype(jnp.float32)      # conv_mask bias -> SMEM scalar
    w1_2 = w1.reshape(Cr, C)                     # se conv1 weight
    w2_2 = w2.reshape(C, Cr)                     # se conv2 weight

    vmem_limit, block_budget = _vmem_budget(max_block_bytes)
    per_batch_bytes = C * HW * x_flat.dtype.itemsize

    if per_batch_bytes <= block_budget:
        out = _se_single_pass(x_flat, wm2, bm1, w1_2, w2_2,
                              block_budget=block_budget,
                              vmem_limit=vmem_limit, donate_x=donate_x)
    else:
        out = _se_two_pass(x_flat, wm2, bm1, w1_2, w2_2,
                           block_budget=block_budget,
                           vmem_limit=vmem_limit, donate_x=donate_x)
    return out.reshape(B, C, H, W)


# ---------------------------------------------------------------------------
# Pure-JAX reference + self-test
# ---------------------------------------------------------------------------
def reference(x, wm, bm, w1, w2):
    B, C, H, W = x.shape
    HW = H * W
    xf = x.reshape(B, C, HW)
    logits = jnp.einsum('c,bcs->bs', wm.reshape(-1), xf) + bm.reshape(())
    p = jax.nn.softmax(logits, axis=-1)                      # (B, HW)
    context = jnp.einsum('bcs,bs->bc', xf, p)                # (B, C)
    hidden = jnp.maximum(
        jnp.einsum('rc,bc->br', w1.reshape(w1.shape[0], C), context), 0.0)
    scale = jax.nn.sigmoid(jnp.einsum('cr,br->bc', w2.reshape(C, -1), hidden))
    return x * scale[:, :, None, None]


if __name__ == "__main__":
    def make_inputs(key, B, C, H, W, reduction=16, dtype=jnp.float32):
        Cr = max(1, C // reduction)
        kx, kwm, kbm, kw1, kw2 = jax.random.split(key, 5)
        x = jax.random.normal(kx, (B, C, H, W), dtype=dtype)
        # conv_mask: kaiming_normal_(fan_in, relu) -> std = sqrt(2 / C)
        wm = jax.random.normal(kwm, (1, C, 1, 1), dtype=dtype) * jnp.sqrt(2.0 / C)
        bm = jax.random.normal(kbm, (1,), dtype=dtype) * 0.1
        w1 = jax.random.normal(kw1, (Cr, C, 1, 1), dtype=dtype) * (1.0 / jnp.sqrt(C))
        w2 = jax.random.normal(kw2, (C, Cr, 1, 1), dtype=dtype) * (1.0 / jnp.sqrt(Cr))
        return x, wm, bm, w1, w2

    key = jax.random.PRNGKey(0)
    cases = [
        dict(B=2, C=32, H=16, W=16, max_block_bytes=None),      # single pass, HW % 128 == 0
        dict(B=3, C=32, H=15, W=15, max_block_bytes=None),      # single pass, no pad for HW % 128 != 0
        dict(B=2, C=32, H=16, W=16, max_block_bytes=8 * 1024),  # forced two-pass (spatial tiling)
        dict(B=2, C=32, H=15, W=15, max_block_bytes=8 * 1024),  # forced two-pass, partial last tile
    ]
    for i, case in enumerate(cases):
        key, sub = jax.random.split(key)
        x, wm, bm, w1, w2 = make_inputs(sub, case["B"], case["C"],
                                        case["H"], case["W"])
        out = jax.block_until_ready(
            squeeze_and_excitation(x, wm, bm, w1, w2,
                                   max_block_bytes=case["max_block_bytes"]))
        ref = reference(x, wm, bm, w1, w2)
        assert out.shape == x.shape, f"case {i}: shape {out.shape} != {x.shape}"
        # tolerance covers MXU f32 accumulation / online-softmax rescaling noise
        assert jnp.allclose(out, ref, atol=1e-4, rtol=1e-4), \
            f"case {i}: mismatch vs reference"
    print("KERNEL_OK")
</pallas_src>

<mosaic_0001>
module attributes {stable_mosaic.version = 11 : i64} {
  func.func @_se_fused_kernel(%arg0: i32, %arg1: memref<1x32xf32, #tpu.memory_space<vmem>>, %arg2: memref<1xf32, #tpu.memory_space<smem>>, %arg3: memref<2x32xf32, #tpu.memory_space<vmem>>, %arg4: memref<32x2xf32, #tpu.memory_space<vmem>>, %arg5: memref<1x32x256xf32, #tpu.memory_space<vmem>>, %arg6: memref<1x32x256xf32, #tpu.memory_space<vmem>>) attributes {dimension_semantics = [#tpu.dimension_semantics<parallel>], iteration_bounds = array<i64: 2>, scalar_prefetch = 0 : i64, scratch_operands = 0 : i64, tpu.core_type = #tpu.core_type<tc>, window_params = [{pipeline_mode = #tpu.pipeline_mode<synchronous>, transform_indices = @transform_0, window_bounds = array<i64: 1, 32>}, {transform_indices = @transform_1, window_bounds = array<i64: 1>}, {pipeline_mode = #tpu.pipeline_mode<synchronous>, transform_indices = @transform_2, window_bounds = array<i64: 2, 32>}, {pipeline_mode = #tpu.pipeline_mode<synchronous>, transform_indices = @transform_3, window_bounds = array<i64: 32, 2>}, {transform_indices = @transform_4, window_bounds = array<i64: 1, 32, 256>}, {transform_indices = @transform_5, window_bounds = array<i64: 1, 32, 256>}]} {
    %c0 = arith.constant 0 : index
    %c0_0 = arith.constant 0 : index
    %c0_1 = arith.constant 0 : index
    %0 = vector.load %arg5[%c0, %c0_0, %c0_1] : memref<1x32x256xf32, #tpu.memory_space<vmem>>, vector<1x32x256xf32>
    %c0_2 = arith.constant 0 : index
    %c0_3 = arith.constant 0 : index
    %1 = vector.load %arg1[%c0_2, %c0_3] : memref<1x32xf32, #tpu.memory_space<vmem>>, vector<1x32xf32>
    %c0_4 = arith.constant 0 : index
    %2 = memref.load %arg2[%c0_4] : memref<1xf32, #tpu.memory_space<smem>>
    %3 = vector.shape_cast %1 : vector<1x32xf32> to vector<1x1x32xf32>
    "tpu.trace_start"() <{level = 10 : i32, message = "boc,bcs->bos"}> : () -> ()
    %cst = arith.constant dense<0.000000e+00> : vector<1x1x256xf32>
    %4 = tpu.matmul %3, %0, %cst {dimension_numbers = #tpu.dot_dimension_numbers<[2], [1], [1], [2], [0, 0, 0, 1, 1, 2], [0], [0]>} : vector<1x1x32xf32>, vector<1x32x256xf32>, vector<1x1x256xf32> -> vector<1x1x256xf32>
    "tpu.trace_stop"() : () -> ()
    %5 = vector.broadcast %2 : f32 to vector<1x1x256xf32>
    %6 = arith.addf %4, %5 : vector<1x1x256xf32>
    %cst_5 = arith.constant dense<0xFF800000> : vector<1x1xf32>
    %7 = vector.multi_reduction <maximumf>, %6, %cst_5 [2] : vector<1x1x256xf32> to vector<1x1xf32>
    %8 = vector.shape_cast %7 : vector<1x1xf32> to vector<1x1x1xf32>
    %9 = vector.broadcast %8 : vector<1x1x1xf32> to vector<1x1x256xf32>
    %10 = arith.subf %6, %9 : vector<1x1x256xf32>
    %11 = math.exp %10 : vector<1x1x256xf32>
    %cst_6 = arith.constant dense<0.000000e+00> : vector<1x1xf32>
    %12 = vector.multi_reduction <add>, %11, %cst_6 [2] : vector<1x1x256xf32> to vector<1x1xf32>
    %13 = vector.shape_cast %12 : vector<1x1xf32> to vector<1x1x1xf32>
    "tpu.trace_start"() <{level = 10 : i32, message = "bcs,bos->bco"}> : () -> ()
    %cst_7 = arith.constant dense<0.000000e+00> : vector<1x32x1xf32>
    %14 = tpu.matmul %0, %11, %cst_7 {dimension_numbers = #tpu.dot_dimension_numbers<[2], [2], [1], [1], [0, 0, 0, 1, 1, 1], [0], [0]>} : vector<1x32x256xf32>, vector<1x1x256xf32>, vector<1x32x1xf32> -> vector<1x32x1xf32>
    "tpu.trace_stop"() : () -> ()
    %15 = vector.shape_cast %14 : vector<1x32x1xf32> to vector<1x32xf32>
    %16 = vector.shape_cast %13 : vector<1x1x1xf32> to vector<1x1xf32>
    %17 = vector.broadcast %16 : vector<1x1xf32> to vector<1x32xf32>
    %18 = arith.divf %15, %17 : vector<1x32xf32>
    %c0_8 = arith.constant 0 : index
    %c0_9 = arith.constant 0 : index
    %19 = vector.load %arg3[%c0_8, %c0_9] : memref<2x32xf32, #tpu.memory_space<vmem>>, vector<2x32xf32>
    %c0_10 = arith.constant 0 : index
    %c0_11 = arith.constant 0 : index
    %20 = vector.load %arg4[%c0_10, %c0_11] : memref<32x2xf32, #tpu.memory_space<vmem>>, vector<32x2xf32>
    %21 = vector.shape_cast %19 : vector<2x32xf32> to vector<1x2x32xf32>
    %22 = vector.shape_cast %18 : vector<1x32xf32> to vector<1x1x32xf32>
    %23 = vector.broadcast %22 : vector<1x1x32xf32> to vector<1x2x32xf32>
    %24 = arith.mulf %21, %23 : vector<1x2x32xf32>
    %cst_12 = arith.constant dense<0.000000e+00> : vector<1x2xf32>
    %25 = vector.multi_reduction <add>, %24, %cst_12 [2] : vector<1x2x32xf32> to vector<1x2xf32>
    %cst_13 = arith.constant 0.000000e+00 : f32
    %26 = vector.broadcast %cst_13 : f32 to vector<1x2xf32>
    %27 = arith.maximumf %25, %26 : vector<1x2xf32>
    %28 = vector.shape_cast %20 : vector<32x2xf32> to vector<1x32x2xf32>
    %29 = vector.shape_cast %27 : vector<1x2xf32> to vector<1x1x2xf32>
    %30 = vector.broadcast %29 : vector<1x1x2xf32> to vector<1x32x2xf32>
    %31 = arith.mulf %28, %30 : vector<1x32x2xf32>
    %cst_14 = arith.constant dense<0.000000e+00> : vector<1x32xf32>
    %32 = vector.multi_reduction <add>, %31, %cst_14 [2] : vector<1x32x2xf32> to vector<1x32xf32>
    %33 = arith.negf %32 : vector<1x32xf32>
    %34 = math.exp %33 : vector<1x32xf32>
    %cst_15 = arith.constant 1.000000e+00 : f32
    %35 = vector.broadcast %cst_15 : f32 to vector<1x32xf32>
    %36 = arith.addf %35, %34 : vector<1x32xf32>
    %37 = arith.divf %35, %36 : vector<1x32xf32>
    %38 = vector.shape_cast %37 : vector<1x32xf32> to vector<1x32x1xf32>
    %39 = vector.broadcast %38 : vector<1x32x1xf32> to vector<1x32x256xf32>
    %40 = arith.mulf %0, %39 : vector<1x32x256xf32>
    %c0_16 = arith.constant 0 : index
    %c0_17 = arith.constant 0 : index
    %c0_18 = arith.constant 0 : index
    %41 = vector.load %arg6[%c0_16, %c0_17, %c0_18] : memref<1x32x256xf32, #tpu.memory_space<vmem>>, vector<1x32x256xf32>
    tpu.vector_store %arg6[%c0_16, %c0_17, %c0_18], %40 {strides = array<i32>} : memref<1x32x256xf32, #tpu.memory_space<vmem>>, vector<1x32x256xf32>,
    return
  }
  func.func @transform_0(%arg0: i32) -> (i32, i32) {
    %c0_i32 = arith.constant 0 : i32
    %c0_i32_0 = arith.constant 0 : i32
    %c0_i32_1 = arith.constant 0 : i32
    return %c0_i32, %c0_i32_0 : i32, i32
  }
  func.func @transform_1(%arg0: i32) -> i32 {
    %c0_i32 = arith.constant 0 : i32
    %c0_i32_0 = arith.constant 0 : i32
    return %c0_i32 : i32
  }
  func.func @transform_2(%arg0: i32) -> (i32, i32) {
    %c0_i32 = arith.constant 0 : i32
    %c0_i32_0 = arith.constant 0 : i32
    %c0_i32_1 = arith.constant 0 : i32
    return %c0_i32, %c0_i32_0 : i32, i32
  }
  func.func @transform_3(%arg0: i32) -> (i32, i32) {
    %c0_i32 = arith.constant 0 : i32
    %c0_i32_0 = arith.constant 0 : i32
    %c0_i32_1 = arith.constant 0 : i32
    return %c0_i32, %c0_i32_0 : i32, i32
  }
  func.func @transform_4(%arg0: i32) -> (i32, i32, i32) {
    %c0_i32 = arith.constant 0 : i32
    %c0_i32_0 = arith.constant 0 : i32
    %c0_i32_1 = arith.constant 0 : i32
    return %arg0, %c0_i32, %c0_i32_0 : i32, i32, i32
  }
  func.func @transform_5(%arg0: i32) -> (i32, i32, i32) {
    %c0_i32 = arith.constant 0 : i32
    %c0_i32_0 = arith.constant 0 : i32
    %c0_i32_1 = arith.constant 0 : i32
    return %arg0, %c0_i32, %c0_i32_0 : i32, i32, i32
  }
}

</mosaic_0001>

<bundles_post_ra>
// kernel: tpu_custom_call.1
= control target key start
LH: loop header
LB: loop body
LE: loop exit
PB: predicated region body
PF: predicated region fallthrough
CT: control target
= control target key end

     0   :  { %s1062_s0 = inlined_call_operand.vmem [shape: f32[1,32], index: 0, kind: input, shape index: {}]   ;;  %s1063_s1 = inlined_call_operand.<no memory space> [shape: f32[1], index: 1, kind: input, shape index: {}]   ;;  %s1064_s2 = inlined_call_operand.vmem [shape: f32[2,32], index: 2, kind: input, shape index: {}]   ;;  %s1065_s3 = inlined_call_operand.vmem [shape: f32[32,2], index: 3, kind: input, shape index: {}]   ;;  %s1066_s4 = inlined_call_operand.hbm [shape: f32[2,32,256], index: 4, kind: input, shape index: {}]   ;;  %s1067_s5 = inlined_call_operand.hbm [shape: f32[2,32,256], index: 5, kind: output, shape index: {}]  }
   0x1   :  { %10 = sst [smem:[#allocation2]] %s1063_s1 }
   0x2   :  { %11 = vsyncpa [#allocation4], 0 }
   0x3   :  { %13 = vsyncpa [#allocation4 + $0x1], 0 }
   0x4   :  { %14 = vsyncpa [#allocation5], 0 }
   0x5   :  { %16 = vsyncpa [#allocation5 + $0x1], 0  ;;  %s851_s20 = smov 0   ;;  %s853_s21 = smov 0  }
   0x6   :  { %s855_s22 = smov 0   ;;  %s857_s23 = smov 0  }
   0x7 LB: > { %s872_s1 = sadd.s32 4294967295, %s811_s23   ;;  %s617_s24 = sadd.s32 4294967294, %s811_s23   ;;  %s811_s23 = sphi %s857_s23, %s1077_s23   ;;  %s807_s22 = sphi %s855_s22, %s1076_s22   ;;  %s803_s21 = sphi %s853_s21, %s1075_s21   ;;  %s799_s20 = sphi %s851_s20, %s1074_s20  }
   0x8   : > { %s876_s25 = sadd.s32 1, %s811_s23   ;;  %s113_s26 = sadd.s32 1, %s807_s22 }
   0x9   : > { %s110_s27 = ssub.s32 %s811_s23, %s876_s25  ;;  %p120_p0 = scmp.ne.s32.totalorder %s807_s22, %s803_s21 }
   0xa   : > { %p111_p1 = scmp.eq.s32.totalorder %s110_s27, 0  ;;  %p121_p2 = scmp.eq.s32.totalorder %s811_s23, 0 }
   0xb   : > { %p126_p3 = scmp.ne.s32.totalorder %s803_s21, %s799_s20  ;;  %p127_p4 = scmp.eq.s32.totalorder %s872_s1, 0 }
   0xc   : > { %s888_s28 = scalar_select %p111_p1, %s807_s22, %s113_s26  }
   0xd   : > { %p890_p5 = por %p121_p2, %p120_p0  ;;  %p894_p6 = por %p127_p4, %p126_p3 }
   0xe   : > { %p150_p7 = scmp.eq.s32.totalorder %s872_s1, 1  ;;  %p156_p8 = scmp.eq.s32.totalorder %s617_s24, 1 }
   0xf   : > { %p651_p10 = scmp.lt.s32.totalorder %s811_s23, 2  ;;  %s188_s8 = sand.u32 1, %s807_s22  }
  0x10   : > { %p901_p11 = por %p150_p7, %p120_p0  ;;  %p905_p12 = por %p156_p8, %p126_p3 }
  0x11   : > { %s637_s9 = sshll.u32 %s811_s23, 6  ;;  %s620_s10 = sshll.u32 %s188_s8, 6 }
  0x12   : > { %s197_s13 = scalar_lea.hbm %s1066_s4, %s637_s9  ;;  %s192_s15 = scalar_lea.vmem [#allocation3], %s620_s10 }
  0x13   : > { %s198_s14 = sshll.u32 %s197_s13, 4  ;;  %s200_s16 = sshll.u32 %s192_s15, 4  ;;  %s199_s14 = int_to_ptr.hbm [resolvable:$true] %s198_s14  ;;  %s201_s16 = int_to_ptr.vmem [resolvable:$true] %s200_s16 }
  0x14   : > { %p916_p13 = pnand %p651_p10, %p890_p5  ;;  %p623_p0 = scmp.ge.s32.totalorder %s811_s23, 1 }
  0x15   : > { %p208_p1 = scmp.lt.s32.totalorder %s811_s23, 3  ;;  %s189_s18 = scalar_lea.sflag [#allocation4], %s188_s8 }
  0x16   : > { %s715_s19 = sshra.s32 %s199_s14, 4  ;;  %p719_p3 = pneg %p916_p13  ;;  %s716_s19 = int_to_ptr.hbm [resolvable:$true] %s715_s19 }
  0x17   : > { %s717_s24 = scalar_lea.hbm %s716_s19, 64  ;;  %s722_s29 = scalar_lea.hbm %s1066_s4, 128 }
  0x18   : > { %p718_p2 = scmp.ne.s32.totalorder %s716_s19, %s717_s24  ;;  %p723_p5 = scmp.lt.s32.totalorder %s716_s19, %s1066_s4 }
  0x19   : > { %p724_p8 = scmp.lt.s32.totalorder %s722_s29, %s717_s24 }
  0x1a   : > { %p720_p4 = pnand %p719_p3, %p718_p2 }
  0x1b   : > { %p725_p10 = por %p724_p8, %p723_p5 }
  0x1c   : > { %p721_p7 = pneg %p720_p4 }
  0x1e   : > { %p726_p9 = pnand %p725_p10, %p721_p7 }
  0x20   : > { %729 = shalt.err (!%p726_p9)
}
  0x21   : > { %s813_s8 = smov 256   ;;  %s814_s11 = smov 16  }
  0x22   : > { %646 = dma.hbm_to_vmem [thread:$0]  (!%p916_p13), %s199_s14, 1024, %s201_s16, %s189_s18, %s813_s8, %s813_s8, %s814_s11  }
  0x23   : > { %p209_p2 = pnand %p623_p0, %p208_p1 }
  0x24   : > { %s937_s12 = sand.u32 (!%p209_p2), 1, %s803_s21  }
  0x25   : > { %212 = sbr.rel (%p209_p2) target bundleno = 859 (0x35b), region = 40  ;;  %s624_s13 = sshll.u32 (!%p209_p2), %s937_s12, 6 }
  0x26   : > { %s215_s15 = scalar_lea.sflag (!%p209_p2), [#allocation4], %s937_s12  ;;  %s218_s19 = scalar_lea.vmem (!%p209_p2), [#allocation3], %s624_s13 }
  0x2a   : > { %790 = dma.done.wait (%p894_p6), %s215_s15, 1024  }
  0x2b   : > { %792 = vsyncadd (%p894_p6), %s215_s15, 4294966272  ;;  %v947_v0 = vld [vmem:[%s218_s19 + $0x30] sm:$0xff]  ;;  %v949_v1 = vld [vmem:[%s218_s19 + $0x38] sm:$0xff]  ;;  %vm257_vm0 = vcmask 261120   ;;  %s255_s16 = sld [smem:[#allocation2]]  ;;  %vm301_vm1 = vcmask 1040384   ;;  %v382_v62 = vlaneseq }
  0x2c   : > { %v951_v2 = vld [vmem:[%s218_s19 + $0x20] sm:$0xff]  ;;  %273 = vmatpush.msra.mxu0 %v947_v0  ;;  %293 = vmatpush.msra.mxu1 %v949_v1  ;;  %v955_v3 = vld [vmem:[%s218_s19 + $0x28] sm:$0xff]  ;;  %v957_v4 = vld [vmem:[%s218_s19 + $0x10] sm:$0xff]  ;;  %v815_v41 = vmov 0   ;;  %vm387_vm6 = vcmask 130112   ;;  %vm391_vm7 = vcmask 195712  }
  0x2d   : > { %v959_v5 = vld [vmem:[%s218_s19 + $0x18] sm:$0xff]  ;;  %v963_v6 = vld [vmem:[%s218_s19] sm:$0xff]  ;;  %v965_v7 = vld [vmem:[%s218_s19 + $0x8] sm:$0xff]  ;;  %692 = vset.pattern.permute.xlu2 %v815_v41  ;;  %691 = vset.pattern.permute.xlu1 %v815_v41  ;;  %vm395_vm8 = vcmask 261312   ;;  %vm399_vm9 = vcmask 254976   ;;  %vm423_vm10 = vcmask 15360  }
  0x2e   : > { %274 = vmatpush.msra.mxu0 %v951_v2  ;;  %294 = vmatpush.msra.mxu1 %v955_v3  ;;  %v254_v8 = vld [vmem:[%s1062_s0] sm:$0x1]  ;;  %s1011_s15 = scalar_lea.vmem [#allocation6], %s624_s13  ;;  %s638_s19 = sshll.u32 %s872_s1, 6 }
  0x2f   : > { %690 = vset.pattern.permute.xlu0 %v815_v41  ;;  %s540_s1 = scalar_lea.hbm %s1067_s5, %s638_s19  ;;  %s541_s14 = sshll.u32 %s1011_s15, 4  ;;  %s542_s14 = int_to_ptr.vmem [resolvable:$true] %s541_s14 }
  0x30   : > { %275 = vmatpush.msra.mxu0 %v957_v4  ;;  %295 = vmatpush.msra.mxu1 %v959_v5  ;;  %s529_s17 = scalar_lea.sflag [#allocation5], %s937_s12  ;;  %s765_s29 = scalar_lea.hbm %s1067_s5, 128 }
  0x31   : > { %v256_v9 = vstv %s255_s16  ;;  %s543_s16 = sshll.u32 %s540_s1, 4  ;;  %s544_s16 = int_to_ptr.hbm [resolvable:$true] %s543_s16 }
  0x32   : > { %276 = vmatpush.msra.mxu0 %v963_v6  ;;  %296 = vmatpush.msra.mxu1 %v965_v7  ;;  %s759_s18 = sshra.s32 %s544_s16, 4  ;;  %s760_s18 = int_to_ptr.hbm [resolvable:$true] %s759_s18 }
  0x33   : > { %626 = vmatmul.msk.f32.vlgmr.msra.gmra.mxu0 %vm257_vm0, %v254_v8  ;;  %627 = vmatmul.msk.f32.vlgmr.msra.gmra.mxu1 %vm257_vm0, %v254_v8  ;;  %v383_v8 = vand.u32 127, %v382_v62  ;;  %s761_s24 = scalar_lea.hbm %s760_s18, 64  ;;  %p766_p0 = scmp.lt.s32.totalorder %s760_s18, %s1067_s5 }
  0x34   : > { %p762_p6 = scmp.ne.s32.totalorder %s760_s18, %s761_s24  ;;  %p767_p1 = scmp.lt.s32.totalorder %s765_s29, %s761_s24 }
  0x36   : > { %p763_p9 = pnand %p762_p6, %p901_p11  ;;  %p768_p3 = por %p767_p1, %p766_p0 }
  0x38   : > { %p764_p13 = pneg %p763_p9 }
  0x3a   : > { %p769_p4 = pnand %p768_p3, %p764_p13 }
  0xb0   : > { %v278_v10 = vpop.f32.mrf.mxu0  ;;  %v298_v11 = vpop.f32.mrf.mxu1 }
  0xb1   : > { %v279_v12 = vadd.f32 %v278_v10, %v256_v9  ;;  %v299_v13 = vadd.f32 %v298_v11, %v256_v9  ;;  %v385_v9 = vadd.s32 4294967288, %v383_v8  ;;  %v389_v10 = vadd.s32 4294967280, %v383_v8 }
  0xb2   : > { %v393_v11 = vadd.s32 4294967272, %v383_v8 }
  0xb3   : > { %v302_v14 = vsel %vm301_vm1, %v279_v12, -inf  ;;  %v303_v15 = vsel %vm301_vm1, %v299_v13, -inf }
  0xb4   : > { %v304_v16 = vmax.f32 %v302_v14, %v303_v15 }
  0xb6   : > { %305 = vmax.xlane.f32.xlu0 %v304_v16 }
 0x129   : > { %v306_v17 = vpop.xlane.xlu0 %305 }
 0x12a   : > { %v307_v18 = vsub.f32 %v279_v12, %v306_v17  ;;  %v308_v19 = vsub.f32 %v299_v13, %v306_v17 }
 0x12c   : > { %v309_v20 = vmul.f32 1.442695, %v307_v18  ;;  %v311_v21 = vmul.f32 1.442695, %v308_v19 }
 0x12e   : > { %693 = vpow2.f32 %v309_v20  ;;  %v361_v20 = vld [vmem:[%s1064_s2] sm:$0x3] }
 0x12f   : > { %695 = vpow2.f32 %v311_v21 }
 0x134   : > { %v694_v22 = vpop.eup %693 }
 0x135   : > { %v696_v23 = vpop.eup %695  ;;  %v318_v24 = vperm.slane %v694_v22, 0  ;;  %v313_v25 = vsel %vm301_vm1, %v694_v22, 0.0 }
 0x136   : > { %v319_v26 = vperm.slane %v696_v23, 0  ;;  %v314_v27 = vsel %vm301_vm1, %v696_v23, 0.0 }
 0x137   : > { %v315_v28 = vadd.f32 %v314_v27, %v313_v25  ;;  %v324_v29 = vmul.f32 %v318_v24, %v951_v2  ;;  %v320_v30 = vmul.f32 %v318_v24, %v963_v6  ;;  %v326_v35 = vmul.f32 %v318_v24, %v947_v0  ;;  %v364_v27 = vld [vmem:[%s1065_s3 + $0x10] sm:$0xff] }
 0x138   : > { %v325_v31 = vmul.f32 %v319_v26, %v955_v3  ;;  %v321_v32 = vmul.f32 %v319_v26, %v965_v7  ;;  %v327_v36 = vmul.f32 %v319_v26, %v949_v1  ;;  %v322_v37 = vmul.f32 %v318_v24, %v957_v4 }
 0x139   : > { %316 = vadd.xlane.f32.xlu0 %v315_v28  ;;  %v323_v38 = vmul.f32 %v319_v26, %v959_v5  ;;  %v363_v28 = vld [vmem:[%s1065_s3 + $0x8] sm:$0xff] }
 0x13a   : > { %v334_v33 = vadd.f32 %v325_v31, %v324_v29  ;;  %v328_v34 = vadd.f32 %v321_v32, %v320_v30  ;;  %v337_v39 = vadd.f32 %v327_v36, %v326_v35  ;;  %v362_v29 = vld [vmem:[%s1065_s3] sm:$0xff] }
 0x13b   : > { %v331_v40 = vadd.f32 %v323_v38, %v322_v37  ;;  %v365_v37 = vld [vmem:[%s1065_s3 + $0x18] sm:$0xff] }
 0x13c   : > { %335 = vadd.xlane.f32.xlu2 %v334_v33  ;;  %329 = vadd.xlane.f32.xlu1 %v328_v34 }
 0x144   : > { %338 = vadd.xlane.f32.xlu2 %v337_v39  ;;  %332 = vadd.xlane.f32.xlu1 %v331_v40 }
 0x1ac   : > { %v317_v42 = vpop.xlane.xlu0 %316 }
 0x1ad   : > { %v341_v43 = vperm.slane %v317_v42, 0 }
 0x1af   : > { %697 = vrcp.f32 %v341_v43  ;;  %v330_v45 = vpop.xlane.xlu1 %329  ;;  %v354_v48 = vand.u32 2147483648, %v341_v43  ;;  %v352_v50 = vand.u32 2147483647, %v341_v43  ;;  %vm348_vm3 = vweird.f32 %v341_v43  ;;  %v336_v52 = vpop.xlane.xlu2 %335 }
 0x1b1   : > { %v355_v53 = vor.u32 1.1754944e-38, %v354_v48  ;;  %vm353_vm5 = vcmp.eq.f32.partialorder %v352_v50, 8.507059e+37 }
 0x1b5   : > { %v698_v44 = vpop.eup %697 }
 0x1b6   : > { %v344_v46 = vmul.f32 %v698_v44, %v341_v43  ;;  %vm349_vm2 = vweird.f32 %v698_v44 }
 0x1b7   : > { %vm350_vm4 = vmor %vm348_vm3, %vm349_vm2  ;;  %v333_v56 = vpop.xlane.xlu1 %332  ;;  %v339_v60 = vpop.xlane.xlu2 %338 }
 0x1b8   : > { %v345_v47 = vsub.f32 1.0, %v344_v46 }
 0x1ba   : > { %v346_v49 = vmul.f32 %v698_v44, %v345_v47 }
 0x1bc   : > { %v347_v51 = vadd.f32 %v698_v44, %v346_v49 }
 0x1be   : > { %v351_v54 = vsel %vm350_vm4, %v698_v44, %v347_v51 }
 0x1bf   : > { %v356_v55 = vsel %vm353_vm5, %v355_v53, %v351_v54 }
 0x1c0   : > { %v359_v57 = vmul.f32 %v356_v55, %v336_v52  ;;  %v357_v58 = vmul.f32 %v356_v55, %v330_v45  ;;  %v358_v59 = vmul.f32 %v356_v55, %v333_v56  ;;  %v360_v61 = vmul.f32 %v356_v55, %v339_v60 }
 0x1c2   : > { %377 = vperm.xlu2 %692, %v359_v57   ;;  %374 = vperm.xlu1 %691, %v358_v59  }
 0x1c3   : > { %371 = vperm.xlu0 %690, %v357_v58  }
 0x1ca   : > { %380 = vperm.xlu2 %692, %v360_v61  }
 0x21c   : > { %v378_v63 = vpop.permute.xlu2 %377 }
 0x21d   : > { %v390_v17 = vperm.slane %v378_v63, %v389_v10 }
 0x224   : > { %v381_v13 = vpop.permute.xlu2 %380 }
 0x225   : > { %v394_v18 = vperm.slane %v381_v13, %v393_v11 }
 0x234   : > { %v375_v12 = vpop.permute.xlu1 %374 }
 0x235   : > { %v386_v14 = vperm.slane %v375_v12, %v385_v9  ;;  %v372_v15 = vpop.permute.xlu0 %371 }
 0x236   : > { %v384_v16 = vperm.slane %v372_v15, %v383_v8 }
 0x238   : > { %v388_v19 = vsel %vm387_vm6, %v386_v14, %v384_v16 }
 0x239   : > { %v392_v21 = vsel %vm391_vm7, %v390_v17, %v388_v19 }
 0x23a   : > { %v396_v22 = vsel %vm395_vm8, %v394_v18, %v392_v21 }
 0x23b   : > { %v398_v23 = vmul.f32 %v396_v22, %v361_v20 }
 0x23d   : > { %v400_v24 = vsel %vm399_vm9, %v398_v23, 0.0 }
 0x23e   : > { %401 = vadd.xlane.f32.xlu1 %v400_v24 }
 0x2b1   : > { %v402_v25 = vpop.xlane.xlu1 %401 }
 0x2b2   : > { %v403_v26 = vmax.f32 %v402_v25, 0.0 }
 0x2b4   : > { %v405_v30 = vperm.slane %v403_v26, %v383_v8 }
 0x2b6   : > { %v421_v31 = vmul.f32 %v405_v30, %v364_v27  ;;  %v420_v32 = vmul.f32 %v405_v30, %v363_v28  ;;  %v419_v33 = vmul.f32 %v405_v30, %v362_v29  ;;  %v422_v38 = vmul.f32 %v405_v30, %v365_v37 }
 0x2b8   : > { %v430_v34 = vsel %vm423_vm10, %v421_v31, 0.0  ;;  %v427_v35 = vsel %vm423_vm10, %v420_v32, 0.0  ;;  %v424_v36 = vsel %vm423_vm10, %v419_v33, 0.0  ;;  %v433_v39 = vsel %vm423_vm10, %v422_v38, 0.0 }
 0x2b9   : > { %431 = vadd.xlane.f32.xlu1 %v430_v34  ;;  %428 = vadd.xlane.f32.xlu0 %v427_v35 }
 0x2ba   : > { %425 = vadd.xlane.f32.xlu2 %v424_v36 }
 0x2c2   : > { %434 = vadd.xlane.f32.xlu2 %v433_v39 }
 0x32c   : > { %v432_v40 = vpop.xlane.xlu1 %431  ;;  %v429_v41 = vpop.xlane.xlu0 %428 }
 0x32d   : > { %v630_v42 = vmul.f32 -1.442695, %v432_v40  ;;  %v629_v43 = vmul.f32 -1.442695, %v429_v41  ;;  %v426_v44 = vpop.xlane.xlu2 %425 }
 0x32e   : > { %v628_v45 = vmul.f32 -1.442695, %v426_v44 }
 0x32f   : > { %699 = vpow2.f32 %v630_v42 }
 0x330   : > { %701 = vpow2.f32 %v629_v43 }
 0x331   : > { %703 = vpow2.f32 %v628_v45 }
 0x335   : > { %v700_v46 = vpop.eup %699  ;;  %v435_v47 = vpop.xlane.xlu2 %434 }
 0x336   : > { %v702_v48 = vpop.eup %701  ;;  %v450_v49 = vadd.f32 1.0, %v700_v46  ;;  %v631_v50 = vmul.f32 -1.442695, %v435_v47 }
 0x337   : > { %v704_v51 = vpop.eup %703  ;;  %v449_v52 = vadd.f32 1.0, %v702_v48 }
 0x338   : > { %705 = vrcp.f32 %v450_v49  ;;  %v448_v53 = vadd.f32 1.0, %v704_v51  ;;  %v491_v60 = vand.u32 2147483647, %v450_v49  ;;  %v493_v63 = vand.u32 2147483648, %v450_v49 }
 0x339   : > { %707 = vrcp.f32 %v449_v52  ;;  %v478_v9 = vand.u32 2147483648, %v449_v52  ;;  %vm487_vm12 = vweird.f32 %v450_v49  ;;  %v476_v13 = vand.u32 2147483647, %v449_v52 }
 0x33a   : > { %709 = vpow2.f32 %v631_v50  ;;  %vm492_vm14 = vcmp.eq.f32.partialorder %v491_v60, 8.507059e+37  ;;  %vm472_vm15 = vweird.f32 %v449_v52  ;;  %v494_v16 = vor.u32 1.1754944e-38, %v493_v63 }
 0x33b   : > { %711 = vrcp.f32 %v448_v53  ;;  %v479_v18 = vor.u32 1.1754944e-38, %v478_v9  ;;  %v463_v19 = vand.u32 2147483648, %v448_v53  ;;  %v461_v22 = vand.u32 2147483647, %v448_v53 }
 0x33c   : > { %vm477_vm3 = vcmp.eq.f32.partialorder %v476_v13, 8.507059e+37  ;;  %vm457_vm4 = vweird.f32 %v448_v53 }
 0x33d   : > { %v464_v32 = vor.u32 1.1754944e-38, %v463_v19  ;;  %vm462_vm6 = vcmp.eq.f32.partialorder %v461_v22, 8.507059e+37 }
 0x33e   : > { %v706_v54 = vpop.eup %705 }
 0x33f   : > { %v708_v55 = vpop.eup %707  ;;  %v483_v56 = vmul.f32 %v706_v54, %v450_v49  ;;  %vm488_vm11 = vweird.f32 %v706_v54 }
 0x340   : > { %v710_v57 = vpop.eup %709  ;;  %v468_v58 = vmul.f32 %v708_v55, %v449_v52  ;;  %vm473_vm13 = vweird.f32 %v708_v55  ;;  %vm489_vm0 = vmor %vm487_vm12, %vm488_vm11 }
 0x341   : > { %v484_v59 = vsub.f32 1.0, %v483_v56  ;;  %v1001_v61 = vadd.f32 1.0, %v710_v57  ;;  %v712_v62 = vpop.eup %711  ;;  %vm474_vm1 = vmor %vm472_vm15, %vm473_vm13 }
 0x342   : > { %v469_v8 = vsub.f32 1.0, %v468_v58  ;;  %v453_v11 = vmul.f32 %v712_v62, %v448_v53  ;;  %vm458_vm2 = vweird.f32 %v712_v62 }
 0x343   : > { %v485_v10 = vmul.f32 %v706_v54, %v484_v59  ;;  %713 = vrcp.f32 %v1001_v61  ;;  %vm459_vm5 = vmor %vm457_vm4, %vm458_vm2  ;;  %v508_v35 = vand.u32 2147483648, %v1001_v61  ;;  %v506_v37 = vand.u32 2147483647, %v1001_v61 }
 0x344   : > { %v470_v12 = vmul.f32 %v708_v55, %v469_v8  ;;  %v454_v15 = vsub.f32 1.0, %v453_v11  ;;  %vm502_vm8 = vweird.f32 %v1001_v61 }
 0x345   : > { %v486_v14 = vadd.f32 %v706_v54, %v485_v10  ;;  %vm507_vm10 = vcmp.eq.f32.partialorder %v506_v37, 8.507059e+37 }
 0x346   : > { %v471_v17 = vadd.f32 %v708_v55, %v470_v12  ;;  %v455_v21 = vmul.f32 %v712_v62, %v454_v15 }
 0x347   : > { %v490_v20 = vsel %vm489_vm0, %v706_v54, %v486_v14 }
 0x348   : > { %v495_v23 = vsel %vm492_vm14, %v494_v16, %v490_v20  ;;  %v475_v24 = vsel %vm474_vm1, %v708_v55, %v471_v17  ;;  %v456_v29 = vadd.f32 %v712_v62, %v455_v21 }
 0x349   : > { %v714_v25 = vpop.eup %713  ;;  %v516_v26 = vmul.f32 %v495_v23, %v951_v2  ;;  %v517_v27 = vmul.f32 %v495_v23, %v955_v3  ;;  %v480_v28 = vsel %vm477_vm3, %v479_v18, %v475_v24 }
 0x34a   : > { %v514_v30 = vmul.f32 %v480_v28, %v957_v4  ;;  %v515_v31 = vmul.f32 %v480_v28, %v959_v5  ;;  %v498_v33 = vmul.f32 %v714_v25, %v1001_v61  ;;  %v460_v2 = vsel %vm459_vm5, %v712_v62, %v456_v29 }
 0x34b   : > { %524 = vst [vmem:[%s1011_s15 + $0x20] sm:$0xff] %v516_v26  ;;  %v465_v3 = vsel %vm462_vm6, %v464_v32, %v460_v2  ;;  %vm503_vm7 = vweird.f32 %v714_v25 }
 0x34c   : > { %525 = vst [vmem:[%s1011_s15 + $0x28] sm:$0xff] %v517_v27  ;;  %v499_v4 = vsub.f32 1.0, %v498_v33  ;;  %v512_v5 = vmul.f32 %v465_v3, %v963_v6  ;;  %v513_v34 = vmul.f32 %v465_v3, %v965_v7  ;;  %vm504_vm9 = vmor %vm502_vm8, %vm503_vm7  ;;  %v509_v6 = vor.u32 1.1754944e-38, %v508_v35 }
 0x34d   : > { %522 = vst [vmem:[%s1011_s15 + $0x10] sm:$0xff] %v514_v30 }
 0x34e   : > { %523 = vst [vmem:[%s1011_s15 + $0x18] sm:$0xff] %v515_v31  ;;  %v500_v36 = vmul.f32 %v714_v25, %v499_v4 }
 0x34f   : > { %520 = vst [vmem:[%s1011_s15] sm:$0xff] %v512_v5 }
 0x350   : > { %521 = vst [vmem:[%s1011_s15 + $0x8] sm:$0xff] %v513_v34  ;;  %v501_v38 = vadd.f32 %v714_v25, %v500_v36 }
 0x352   : > { %v505_v7 = vsel %vm504_vm9, %v714_v25, %v501_v38 }
 0x353   : > { %v510_v39 = vsel %vm507_vm10, %v509_v6, %v505_v7 }
 0x354   : > { %v518_v40 = vmul.f32 %v510_v39, %v947_v0  ;;  %v519_v41 = vmul.f32 %v510_v39, %v949_v1 }
 0x356   : > { %526 = vst [vmem:[%s1011_s15 + $0x30] sm:$0xff] %v518_v40 }
 0x357   : > { %527 = vst [vmem:[%s1011_s15 + $0x38] sm:$0xff] %v519_v41 }
 0x358   : > { %772 = shalt.err (!%p769_p4)
}
 0x359   : > { %s816_s12 = smov 256   ;;  %s817_s8 = smov 16  }
 0x35a   : > { %641 = dma.vmem_to_hbm [thread:$0]  (%p901_p11), %s542_s14, 1024, %s544_s16, %s529_s17, %s816_s12, %s816_s12, %s817_s8  }
 0x35b PF: > { %s558_s11 = sand.u32 1, %s799_s20   ;;  %p1073_p7 = scmp.ge.s32.totalorder %s811_s23, 2 }
 0x35c   : > { %s559_s15 = scalar_lea.sflag [#allocation5], %s558_s11 }
 0x35d   : > { %p648_p5 = pnand %p1073_p7, %p905_p12 }
 0x35f   : > { %p649_p8 = pneg %p648_p5 }
 0x361   : > { %794 = dma.done.wait (%p649_p8), %s559_s15, 1024  }
 0x362   : > { %796 = vsyncadd (%p649_p8), %s559_s15, 4294966272  ;;  %p19_p10 = scmp.ge.s32.totalorder %s876_s25, 4   ;;  %s1074_s20 = smov %s803_s21 }
 0x363   : > { %s1075_s21 = smov %s807_s22  ;;  %s1076_s22 = smov %s888_s28 }
 0x364   : > { %s1077_s23 = smov %s876_s25  ;;  %21 = sbr.rel (!%p19_p10) target bundleno = 7 (0x7), region = 85 }
 0x369   :  { %565 = vsyncpa [#allocation4], 1 }
 0x36a   :  { %567 = vsyncpa [#allocation4 + $0x1], 1 }
 0x36b   :  { %568 = vsyncpa [#allocation5], 1 }
 0x36c   :  { %570 = vsyncpa [#allocation5 + $0x1], 1 }

</bundles_post_ra>
